<compile_context>
chip_gen: v5e
topology: v5e:2x2
jax: 0.10.0
libtpu: 0.0.40
codegen_flags: <defaults>
</compile_context>

<pallas_src>
import jax
import jax.numpy as jnp
from jax import lax
from jax.experimental import pallas as pl
from jax.experimental.pallas import tpu as pltpu

SPACE_SIZE = 4       # CartPole-v1 observation_space.shape[0]
ACTION_SPACE = 2     # CartPole-v1 action_space.n
HIDDEN = 64
LANE = 128           # vreg lane width; batch tile must be a multiple of this
MAX_TILE_B = 4096    # per-step batch tile cap (keeps VMEM well under limits)


def actor_mlp_kernel(x_ref, w1_ref, b1_ref, w2_ref, b2_ref, w3_ref, b3_ref, o_ref):
    # x:  [TILE_B, SPACE_SIZE]    (batch-major, exactly as stored in HBM)
    # w1: [HIDDEN, SPACE_SIZE],   b1: [HIDDEN, 1]
    # w2: [HIDDEN, HIDDEN],       b2: [HIDDEN, 1]
    # w3: [ACTION_SPACE, HIDDEN], b3: [ACTION_SPACE, 1]
    # o:  [ACTION_SPACE, TILE_B]  (feature-major -> lane-dense stores)

    # Layer 1 (MXU): contract the K=4 feature dim of both operands; the result
    # is feature-major [HIDDEN, TILE_B] so batch lands on the lane axis.
    h1 = lax.dot_general(
        w1_ref[...], x_ref[...],
        dimension_numbers=(((1,), (1,)), ((), ())),
        preferred_element_type=jnp.float32,
    ) + b1_ref[...]
    h1 = jnp.maximum(h1, 0.0)

    # Layers 2/3 (MXU): f32-accumulate matmuls on lane-dense activations.
    h2 = jnp.dot(w2_ref[...], h1, preferred_element_type=jnp.float32) + b2_ref[...]
    h2 = jnp.maximum(h2, 0.0)

    out = jnp.dot(w3_ref[...], h2, preferred_element_type=jnp.float32) + b3_ref[...]
    o_ref[...] = out.astype(o_ref.dtype)


def _tiling(batch):
    """Pick (tile_b, padded_batch, grid_steps) for a given batch size."""
    m = -(-batch // LANE)                # batch in 128-row groups, >= 1
    max_m = MAX_TILE_B // LANE
    # Enough steps to honor the tile cap; keep >=2 steps when the batch allows
    # so v7x's two TensorCores both get work (negligible cost on v5e/v6e).
    steps = max(-(-m // max_m), 2 if m >= 2 else 1)
    tile_m = -(-m // steps)
    tb = LANE * tile_m
    return tb, tb * steps, steps


@jax.jit
def actor_forward(states, params):
    """states: [B, SPACE_SIZE] float32 -> logits [B, ACTION_SPACE] float32."""
    w1, b1, w2, b2, w3, b3 = params      # PyTorch layout: w [out, in], b [out, 1]
    B = states.shape[0]
    tb, bp, steps = _tiling(B)

    # Row-pad only (no transpose).  Padded rows produce bias-only logits that
    # are sliced off before returning.
    x = states if bp == B else jnp.pad(states, ((0, bp - B), (0, 0)))

    # Constant index_map -> fetched once, VMEM-resident across grid steps.
    resident = lambda a: pl.BlockSpec(a.shape, lambda i: (0, 0))

    out_fm = pl.pallas_call(
        actor_mlp_kernel,
        out_shape=jax.ShapeDtypeStruct((ACTION_SPACE, bp), jnp.float32),
        grid=(steps,),
        in_specs=[
            pl.BlockSpec((tb, SPACE_SIZE), lambda i: (i, 0)),
            resident(w1), resident(b1),
            resident(w2), resident(b2),
            resident(w3), resident(b3),
        ],
        out_specs=pl.BlockSpec((ACTION_SPACE, tb), lambda i: (0, i)),
        compiler_params=pltpu.CompilerParams(
            dimension_semantics=("parallel",)),   # v7x: shard steps across both TCs
    )(x, w1, b1, w2, b2, w3, b3)

    return out_fm[:, :B].T                        # [B, ACTION_SPACE]


def init_params(key):
    """Deterministic init mirroring nn.Linear: U(-1/sqrt(fan_in), 1/sqrt(fan_in)).

    Weights use the PyTorch layout [out_features, in_features]; biases are
    stored [out_features, 1] (the column form the kernel broadcasts)."""
    def linear(k, fan_in, fan_out):
        kw, kb = jax.random.split(k)
        bound = 1.0 / jnp.sqrt(fan_in)
        w = jax.random.uniform(kw, (fan_out, fan_in), jnp.float32, -bound, bound)
        b = jax.random.uniform(kb, (fan_out, 1), jnp.float32, -bound, bound)
        return w, b

    k1, k2, k3 = jax.random.split(key, 3)
    w1, b1 = linear(k1, SPACE_SIZE, HIDDEN)
    w2, b2 = linear(k2, HIDDEN, HIDDEN)
    w3, b3 = linear(k3, HIDDEN, ACTION_SPACE)
    return (w1, b1, w2, b2, w3, b3)


def reference_forward(states, params):
    w1, b1, w2, b2, w3, b3 = params
    h1 = jnp.maximum(states @ w1.T + b1[:, 0], 0.0)
    h2 = jnp.maximum(h1 @ w2.T + b2[:, 0], 0.0)
    return h2 @ w3.T + b3[:, 0]


if __name__ == "__main__":
    key = jax.random.PRNGKey(0)
    k_params, k_small, k_multi = jax.random.split(key, 3)
    params = init_params(k_params)

    # Small batch (single grid step, padded 8 -> 128 rows).
    B = 8
    states = jax.random.normal(k_small, (B, SPACE_SIZE), jnp.float32)
    out = jax.block_until_ready(actor_forward(states, params))
    assert out.shape == (B, ACTION_SPACE)
    assert jnp.allclose(out, reference_forward(states, params), atol=1e-4, rtol=1e-4)

    # Batch exercising the 2-step grid + row-padding path (200 -> 256 rows).
    B2 = 200
    states2 = jax.random.normal(k_multi, (B2, SPACE_SIZE), jnp.float32)
    out2 = jax.block_until_ready(actor_forward(states2, params))
    assert out2.shape == (B2, ACTION_SPACE)
    assert jnp.allclose(out2, reference_forward(states2, params), atol=1e-4, rtol=1e-4)

    print("KERNEL_OK")
</pallas_src>

<mosaic_0001>
module attributes {stable_mosaic.version = 11 : i64} {
  func.func @actor_mlp_kernel(%arg0: i32, %arg1: memref<128x4xf32, #tpu.memory_space<vmem>>, %arg2: memref<64x4xf32, #tpu.memory_space<vmem>>, %arg3: memref<64x1xf32, #tpu.memory_space<vmem>>, %arg4: memref<64x64xf32, #tpu.memory_space<vmem>>, %arg5: memref<64x1xf32, #tpu.memory_space<vmem>>, %arg6: memref<2x64xf32, #tpu.memory_space<vmem>>, %arg7: memref<2x1xf32, #tpu.memory_space<vmem>>, %arg8: memref<2x128xf32, #tpu.memory_space<vmem>>) attributes {dimension_semantics = [#tpu.dimension_semantics<parallel>], iteration_bounds = array<i64: 1>, scalar_prefetch = 0 : i64, scratch_operands = 0 : i64, tpu.core_type = #tpu.core_type<tc>, window_params = [{transform_indices = @transform_0, window_bounds = array<i64: 128, 4>}, {pipeline_mode = #tpu.pipeline_mode<synchronous>, transform_indices = @transform_1, window_bounds = array<i64: 64, 4>}, {pipeline_mode = #tpu.pipeline_mode<synchronous>, transform_indices = @transform_2, window_bounds = array<i64: 64, 1>}, {pipeline_mode = #tpu.pipeline_mode<synchronous>, transform_indices = @transform_3, window_bounds = array<i64: 64, 64>}, {pipeline_mode = #tpu.pipeline_mode<synchronous>, transform_indices = @transform_4, window_bounds = array<i64: 64, 1>}, {pipeline_mode = #tpu.pipeline_mode<synchronous>, transform_indices = @transform_5, window_bounds = array<i64: 2, 64>}, {pipeline_mode = #tpu.pipeline_mode<synchronous>, transform_indices = @transform_6, window_bounds = array<i64: 2, 1>}, {transform_indices = @transform_7, window_bounds = array<i64: 2, 128>}]} {
    %c0 = arith.constant 0 : index
    %c0_0 = arith.constant 0 : index
    %0 = vector.load %arg2[%c0, %c0_0] : memref<64x4xf32, #tpu.memory_space<vmem>>, vector<64x4xf32>
    %c0_1 = arith.constant 0 : index
    %c0_2 = arith.constant 0 : index
    %1 = vector.load %arg1[%c0_1, %c0_2] : memref<128x4xf32, #tpu.memory_space<vmem>>, vector<128x4xf32>
    %cst = arith.constant dense<0.000000e+00> : vector<64x128xf32>
    %2 = tpu.matmul %0, %1, %cst {dimension_numbers = #tpu.dot_dimension_numbers<[1], [1], [0], [0], [0, 0, 1, 0], [], []>} : vector<64x4xf32>, vector<128x4xf32>, vector<64x128xf32> -> vector<64x128xf32>
    %c0_3 = arith.constant 0 : index
    %c0_4 = arith.constant 0 : index
    %3 = vector.load %arg3[%c0_3, %c0_4] : memref<64x1xf32, #tpu.memory_space<vmem>>, vector<64x1xf32>
    %4 = vector.broadcast %3 : vector<64x1xf32> to vector<64x128xf32>
    %5 = arith.addf %2, %4 : vector<64x128xf32>
    %cst_5 = arith.constant 0.000000e+00 : f32
    %6 = vector.broadcast %cst_5 : f32 to vector<64x128xf32>
    %7 = arith.maximumf %5, %6 : vector<64x128xf32>
    %c0_6 = arith.constant 0 : index
    %c0_7 = arith.constant 0 : index
    %8 = vector.load %arg4[%c0_6, %c0_7] : memref<64x64xf32, #tpu.memory_space<vmem>>, vector<64x64xf32>
    %cst_8 = arith.constant dense<0.000000e+00> : vector<64x128xf32>
    %9 = tpu.matmul %8, %7, %cst_8 {dimension_numbers = #tpu.dot_dimension_numbers<[1], [0], [0], [1], [0, 0, 1, 1], [], []>} : vector<64x64xf32>, vector<64x128xf32>, vector<64x128xf32> -> vector<64x128xf32>
    %c0_9 = arith.constant 0 : index
    %c0_10 = arith.constant 0 : index
    %10 = vector.load %arg5[%c0_9, %c0_10] : memref<64x1xf32, #tpu.memory_space<vmem>>, vector<64x1xf32>
    %11 = vector.broadcast %10 : vector<64x1xf32> to vector<64x128xf32>
    %12 = arith.addf %9, %11 : vector<64x128xf32>
    %cst_11 = arith.constant 0.000000e+00 : f32
    %13 = vector.broadcast %cst_11 : f32 to vector<64x128xf32>
    %14 = arith.maximumf %12, %13 : vector<64x128xf32>
    %c0_12 = arith.constant 0 : index
    %c0_13 = arith.constant 0 : index
    %15 = vector.load %arg6[%c0_12, %c0_13] : memref<2x64xf32, #tpu.memory_space<vmem>>, vector<2x64xf32>
    %cst_14 = arith.constant dense<0.000000e+00> : vector<2x128xf32>
    %16 = tpu.matmul %15, %14, %cst_14 {dimension_numbers = #tpu.dot_dimension_numbers<[1], [0], [0], [1], [0, 0, 1, 1], [], []>} : vector<2x64xf32>, vector<64x128xf32>, vector<2x128xf32> -> vector<2x128xf32>
    %c0_15 = arith.constant 0 : index
    %c0_16 = arith.constant 0 : index
    %17 = vector.load %arg7[%c0_15, %c0_16] : memref<2x1xf32, #tpu.memory_space<vmem>>, vector<2x1xf32>
    %18 = vector.broadcast %17 : vector<2x1xf32> to vector<2x128xf32>
    %19 = arith.addf %16, %18 : vector<2x128xf32>
    %c0_17 = arith.constant 0 : index
    %c0_18 = arith.constant 0 : index
    %20 = vector.load %arg8[%c0_17, %c0_18] : memref<2x128xf32, #tpu.memory_space<vmem>>, vector<2x128xf32>
    tpu.vector_store %arg8[%c0_17, %c0_18], %19 {strides = array<i32>} : memref<2x128xf32, #tpu.memory_space<vmem>>, vector<2x128xf32>,
    return
  }
  func.func @transform_0(%arg0: i32) -> (i32, i32) {
    %c0_i32 = arith.constant 0 : i32
    %c0_i32_0 = arith.constant 0 : i32
    return %arg0, %c0_i32 : i32, i32
  }
  func.func @transform_1(%arg0: i32) -> (i32, i32) {
    %c0_i32 = arith.constant 0 : i32
    %c0_i32_0 = arith.constant 0 : i32
    %c0_i32_1 = arith.constant 0 : i32
    return %c0_i32, %c0_i32_0 : i32, i32
  }
  func.func @transform_2(%arg0: i32) -> (i32, i32) {
    %c0_i32 = arith.constant 0 : i32
    %c0_i32_0 = arith.constant 0 : i32
    %c0_i32_1 = arith.constant 0 : i32
    return %c0_i32, %c0_i32_0 : i32, i32
  }
  func.func @transform_3(%arg0: i32) -> (i32, i32) {
    %c0_i32 = arith.constant 0 : i32
    %c0_i32_0 = arith.constant 0 : i32
    %c0_i32_1 = arith.constant 0 : i32
    return %c0_i32, %c0_i32_0 : i32, i32
  }
  func.func @transform_4(%arg0: i32) -> (i32, i32) {
    %c0_i32 = arith.constant 0 : i32
    %c0_i32_0 = arith.constant 0 : i32
    %c0_i32_1 = arith.constant 0 : i32
    return %c0_i32, %c0_i32_0 : i32, i32
  }
  func.func @transform_5(%arg0: i32) -> (i32, i32) {
    %c0_i32 = arith.constant 0 : i32
    %c0_i32_0 = arith.constant 0 : i32
    %c0_i32_1 = arith.constant 0 : i32
    return %c0_i32, %c0_i32_0 : i32, i32
  }
  func.func @transform_6(%arg0: i32) -> (i32, i32) {
    %c0_i32 = arith.constant 0 : i32
    %c0_i32_0 = arith.constant 0 : i32
    %c0_i32_1 = arith.constant 0 : i32
    return %c0_i32, %c0_i32_0 : i32, i32
  }
  func.func @transform_7(%arg0: i32) -> (i32, i32) {
    %c0_i32 = arith.constant 0 : i32
    %c0_i32_0 = arith.constant 0 : i32
    return %c0_i32, %arg0 : i32, i32
  }
}

</mosaic_0001>

<bundles_post_ra>
// kernel: actor_forward.1
= control target key start
LH: loop header
LB: loop body
LE: loop exit
PB: predicated region body
PF: predicated region fallthrough
CT: control target
= control target key end

     0   :  { %vm98_vm0 = vcmask 31744   ;;  %v454_v7 = vmov 0   ;;  %vm276_vm1 = vcmask 523264   ;;  %s713_s0 = inlined_call_operand.vmem [shape: f32[128,4], index: 0, kind: input, shape index: {}]   ;;  %s714_s2 = inlined_call_operand.vmem [shape: f32[64,1], index: 2, kind: input, shape index: {}]   ;;  %s715_s4 = inlined_call_operand.vmem [shape: f32[64,1], index: 4, kind: input, shape index: {}]   ;;  %s716_s6 = inlined_call_operand.vmem [shape: f32[2,1], index: 6, kind: input, shape index: {}]   ;;  %s717_s1 = inlined_call_operand.vmem [shape: f32[64,4], index: 1, kind: input, shape index: {}]   ;;  %s718_s3 = inlined_call_operand.vmem [shape: f32[64,64], index: 3, kind: input, shape index: {}]   ;;  %s719_s5 = inlined_call_operand.vmem [shape: f32[2,64], index: 5, kind: input, shape index: {}]   ;;  %s720_s7 = inlined_call_operand.vmem [shape: f32[2,128], index: 7, kind: output, shape index: {}]  }
   0x1   :  { %v49_v0 = vld [vmem:[%s713_s0 + $0x78] sm:$0xff]  ;;  %v48_v1 = vld [vmem:[%s713_s0 + $0x70] sm:$0xff]  ;;  %v47_v2 = vld [vmem:[%s713_s0 + $0x68] sm:$0xff]  ;;  %451 = vset.pattern.permute.xlu0 %v454_v7  ;;  %452 = vset.pattern.permute.xlu1 %v454_v7 }
   0x2   :  { %419 = vmatpush.xpose.msk.msra.mxu3 %vm98_vm0, %v49_v0  ;;  %418 = vmatpush.xpose.msk.msra.mxu2 %vm98_vm0, %v49_v0  ;;  %v46_v3 = vld [vmem:[%s713_s0 + $0x60] sm:$0xff]  ;;  %v45_v4 = vld [vmem:[%s713_s0 + $0x58] sm:$0xff]  ;;  %v44_v6 = vld [vmem:[%s713_s0 + $0x50] sm:$0xff] }
   0x3   :  { %385 = vmatpush.xpose.msk.msra.mxu0 %vm98_vm0, %v49_v0  ;;  %v57_v5 = vld [vmem:[%s714_s2 + $0x38] sm:$0xff]  ;;  %453 = vset.pattern.permute.xlu2 %v454_v7  ;;  %v55_v8 = vld [vmem:[%s714_s2 + $0x28] sm:$0xff]  ;;  %v56_v10 = vld [vmem:[%s714_s2 + $0x30] sm:$0xff] }
   0x4   :  { %95 = vperm.xlu0 %451, %v57_v5   ;;  %v43_v9 = vld [vmem:[%s713_s0 + $0x48] sm:$0xff]  ;;  %85 = vperm.xlu1 %452, %v55_v8   ;;  %v42_v11 = vld [vmem:[%s713_s0 + $0x40] sm:$0xff]  ;;  %v41_v13 = vld [vmem:[%s713_s0 + $0x38] sm:$0xff] }
   0x5   :  { %v54_v12 = vld [vmem:[%s714_s2 + $0x20] sm:$0xff]  ;;  %v51_v14 = vld [vmem:[%s714_s2 + $0x8] sm:$0xff]  ;;  %v40_v15 = vld [vmem:[%s713_s0 + $0x30] sm:$0xff] }
   0x6   :  { %421 = vmatpush.xpose.msk.msra.mxu3 %vm98_vm0, %v48_v1  ;;  %420 = vmatpush.xpose.msk.msra.mxu2 %vm98_vm0, %v48_v1  ;;  %v50_v16 = vld [vmem:[%s714_s2] sm:$0xff]  ;;  %v39_v17 = vld [vmem:[%s713_s0 + $0x28] sm:$0xff]  ;;  %v234_v18 = vld [vmem:[%s715_s4 + $0x30] sm:$0xff] }
   0x7   :  { %386 = vmatpush.xpose.msk.msra.mxu0 %vm98_vm0, %v48_v1  ;;  %v38_v19 = vld [vmem:[%s713_s0 + $0x20] sm:$0xff]  ;;  %v233_v20 = vld [vmem:[%s715_s4 + $0x28] sm:$0xff]  ;;  %v37_v21 = vld [vmem:[%s713_s0 + $0x18] sm:$0xff] }
   0x8   :  { %v231_v22 = vld [vmem:[%s715_s4 + $0x18] sm:$0xff]  ;;  %v36_v24 = vld [vmem:[%s713_s0 + $0x10] sm:$0xff]  ;;  %v35_v26 = vld [vmem:[%s713_s0 + $0x8] sm:$0xff] }
   0x9   :  { %v53_v23 = vld [vmem:[%s714_s2 + $0x18] sm:$0xff]  ;;  %v230_v25 = vld [vmem:[%s715_s4 + $0x10] sm:$0xff]  ;;  %v228_v28 = vld [vmem:[%s715_s4] sm:$0xff] }
   0xa   :  { %423 = vmatpush.xpose.msk.msra.mxu3 %vm98_vm0, %v47_v2  ;;  %422 = vmatpush.xpose.msk.msra.mxu2 %vm98_vm0, %v47_v2  ;;  %v52_v27 = vld [vmem:[%s714_s2 + $0x10] sm:$0xff]  ;;  %v34_v29 = vld [vmem:[%s713_s0] sm:$0xff]  ;;  %v31_v31 = vld [vmem:[%s717_s1 + $0x28] sm:$0xff] }
   0xb   :  { %387 = vmatpush.xpose.msk.msra.mxu0 %vm98_vm0, %v47_v2  ;;  %75 = vperm.xlu2 %453, %v53_v23   ;;  %v351_v30 = vld [vmem:[%s716_s6] sm:$0x3]  ;;  %v29_v32 = vld [vmem:[%s717_s1 + $0x18] sm:$0xff]  ;;  %v32_v35 = vld [vmem:[%s717_s1 + $0x30] sm:$0xff] }
   0xc   :  { %90 = vperm.xlu0 %451, %v56_v10   ;;  %80 = vperm.xlu1 %452, %v54_v12   ;;  %v26_v33 = vld [vmem:[%s717_s1] sm:$0xff]  ;;  %v235_v34 = vld [vmem:[%s715_s4 + $0x38] sm:$0xff]  ;;  %v27_v37 = vld [vmem:[%s717_s1 + $0x8] sm:$0xff] }
   0xd   :  { %v30_v36 = vld [vmem:[%s717_s1 + $0x20] sm:$0xff]  ;;  %v33_v39 = vld [vmem:[%s717_s1 + $0x38] sm:$0xff]  ;;  %v28_v40 = vld [vmem:[%s717_s1 + $0x10] sm:$0xff] }
   0xe   :  { %425 = vmatpush.xpose.msk.msra.mxu3 %vm98_vm0, %v46_v3  ;;  %424 = vmatpush.xpose.msk.msra.mxu2 %vm98_vm0, %v46_v3  ;;  %v232_v38 = vld [vmem:[%s715_s4 + $0x20] sm:$0xff]  ;;  %v229_v41 = vld [vmem:[%s715_s4 + $0x8] sm:$0xff]  ;;  %v222_v12 = vld [vmem:[%s718_s3 + $0x10] sm:$0xff] }
   0xf   :  { %388 = vmatpush.xpose.msk.msra.mxu0 %vm98_vm0, %v46_v3  ;;  %v220_v10 = vld [vmem:[%s718_s3] sm:$0xff] }
  0x12   :  { %427 = vmatpush.xpose.msk.msra.mxu3 %vm98_vm0, %v45_v4  ;;  %426 = vmatpush.xpose.msk.msra.mxu2 %vm98_vm0, %v45_v4 }
  0x13   :  { %389 = vmatpush.xpose.msk.msra.mxu0 %vm98_vm0, %v45_v4  ;;  %70 = vperm.xlu2 %453, %v52_v27  }
  0x14   :  { %65 = vperm.xlu0 %451, %v51_v14   ;;  %60 = vperm.xlu1 %452, %v50_v16   ;;  %v224_v14 = vld [vmem:[%s718_s3 + $0x20] sm:$0xff]  ;;  %v226_v16 = vld [vmem:[%s718_s3 + $0x30] sm:$0xff] }
  0x16   :  { %429 = vmatpush.xpose.msk.msra.mxu3 %vm98_vm0, %v44_v6  ;;  %428 = vmatpush.xpose.msk.msra.mxu2 %vm98_vm0, %v44_v6 }
  0x17   :  { %390 = vmatpush.xpose.msk.msra.mxu0 %vm98_vm0, %v44_v6 }
  0x1a   :  { %431 = vmatpush.xpose.msk.msra.mxu3 %vm98_vm0, %v43_v9  ;;  %430 = vmatpush.xpose.msk.msra.mxu2 %vm98_vm0, %v43_v9 }
  0x1b   :  { %391 = vmatpush.xpose.msk.msra.mxu0 %vm98_vm0, %v43_v9  ;;  %273 = vperm.xlu2 %453, %v235_v34  }
  0x1c   :  { %268 = vperm.xlu0 %451, %v234_v18   ;;  %263 = vperm.xlu1 %452, %v233_v20  }
  0x1e   :  { %433 = vmatpush.xpose.msk.msra.mxu3 %vm98_vm0, %v42_v11  ;;  %432 = vmatpush.xpose.msk.msra.mxu2 %vm98_vm0, %v42_v11 }
  0x1f   :  { %392 = vmatpush.xpose.msk.msra.mxu0 %vm98_vm0, %v42_v11  ;;  %v221_v11 = vld [vmem:[%s718_s3 + $0x8] sm:$0xff] }
  0x22   :  { %435 = vmatpush.xpose.msk.msra.mxu3 %vm98_vm0, %v41_v13  ;;  %434 = vmatpush.xpose.msk.msra.mxu2 %vm98_vm0, %v41_v13 }
  0x23   :  { %393 = vmatpush.xpose.msk.msra.mxu0 %vm98_vm0, %v41_v13  ;;  %258 = vperm.xlu2 %453, %v232_v38   ;;  %v223_v13 = vld [vmem:[%s718_s3 + $0x18] sm:$0xff] }
  0x24   :  { %253 = vperm.xlu0 %451, %v231_v22   ;;  %248 = vperm.xlu1 %452, %v230_v25  }
  0x26   :  { %437 = vmatpush.xpose.msk.msra.mxu3 %vm98_vm0, %v40_v15  ;;  %436 = vmatpush.xpose.msk.msra.mxu2 %vm98_vm0, %v40_v15 }
  0x27   :  { %394 = vmatpush.xpose.msk.msra.mxu0 %vm98_vm0, %v40_v15  ;;  %v225_v15 = vld [vmem:[%s718_s3 + $0x28] sm:$0xff] }
  0x2a   :  { %439 = vmatpush.xpose.msk.msra.mxu3 %vm98_vm0, %v39_v17  ;;  %438 = vmatpush.xpose.msk.msra.mxu2 %vm98_vm0, %v39_v17 }
  0x2b   :  { %395 = vmatpush.xpose.msk.msra.mxu0 %vm98_vm0, %v39_v17  ;;  %243 = vperm.xlu2 %453, %v229_v41   ;;  %v227_v17 = vld [vmem:[%s718_s3 + $0x38] sm:$0xff] }
  0x2c   :  { %238 = vperm.xlu0 %451, %v228_v28   ;;  %354 = vperm.xlu1 %452, %v351_v30  }
  0x2e   :  { %441 = vmatpush.xpose.msk.msra.mxu3 %vm98_vm0, %v38_v19  ;;  %440 = vmatpush.xpose.msk.msra.mxu2 %vm98_vm0, %v38_v19 }
  0x2f   :  { %396 = vmatpush.xpose.msk.msra.mxu0 %vm98_vm0, %v38_v19 }
  0x32   :  { %443 = vmatpush.xpose.msk.msra.mxu3 %vm98_vm0, %v37_v21  ;;  %442 = vmatpush.xpose.msk.msra.mxu2 %vm98_vm0, %v37_v21 }
  0x33   :  { %397 = vmatpush.xpose.msk.msra.mxu0 %vm98_vm0, %v37_v21 }
  0x36   :  { %445 = vmatpush.xpose.msk.msra.mxu3 %vm98_vm0, %v36_v24  ;;  %444 = vmatpush.xpose.msk.msra.mxu2 %vm98_vm0, %v36_v24 }
  0x37   :  { %398 = vmatpush.xpose.msk.msra.mxu0 %vm98_vm0, %v36_v24 }
  0x3a   :  { %447 = vmatpush.xpose.msk.msra.mxu3 %vm98_vm0, %v35_v26  ;;  %446 = vmatpush.xpose.msk.msra.mxu2 %vm98_vm0, %v35_v26 }
  0x3b   :  { %399 = vmatpush.xpose.msk.msra.mxu0 %vm98_vm0, %v35_v26 }
  0x3e   :  { %449 = vmatpush.xpose.msk.msra.mxu3 %vm98_vm0, %v34_v29  ;;  %448 = vmatpush.xpose.msk.msra.mxu2 %vm98_vm0, %v34_v29 }
  0x3f   :  { %400 = vmatpush.xpose.msk.msra.mxu0 %vm98_vm0, %v34_v29 }
  0x41   :  { %406 = vmatmul.msk.f32.vlgmr.msra.gmra.mxu3 %vm98_vm0, %v31_v31  ;;  %404 = vmatmul.msk.f32.vlgmr.msra.gmra.mxu2 %vm98_vm0, %v29_v32 }
  0x42   :  { %401 = vmatmul.msk.f32.vlgmr.msra.gmra.mxu0 %vm98_vm0, %v26_v33 }
  0x49   :  { %407 = vmatmul.msk.f32.gmra.mxu3 %vm98_vm0, %v32_v35  ;;  %405 = vmatmul.msk.f32.gmra.mxu2 %vm98_vm0, %v30_v36 }
  0x4a   :  { %402 = vmatmul.msk.f32.gmra.mxu0 %vm98_vm0, %v27_v37 }
  0x51   :  { %408 = vmatmul.msk.f32.gmra.mxu3 %vm98_vm0, %v33_v39 }
  0x52   :  { %403 = vmatmul.msk.f32.gmra.mxu0 %vm98_vm0, %v28_v40 }
  0x65   :  { %v76_v49 = vpop.permute.xlu2 %75 }
  0x6d   :  { %v71_v63 = vpop.permute.xlu2 %70 }
  0x75   :  { %v274_v24 = vpop.permute.xlu2 %273 }
  0x76   :  { %v96_v44 = vpop.permute.xlu0 %95  ;;  %v86_v45 = vpop.permute.xlu1 %85 }
  0x7d   :  { %v259_v28 = vpop.permute.xlu2 %258 }
  0x7e   :  { %v91_v50 = vpop.permute.xlu0 %90  ;;  %v81_v54 = vpop.permute.xlu1 %80 }
  0x86   :  { %v66_v2 = vpop.permute.xlu0 %65  ;;  %v61_v5 = vpop.permute.xlu1 %60 }
  0x8e   :  { %v269_v25 = vpop.permute.xlu0 %268  ;;  %v264_v27 = vpop.permute.xlu1 %263 }
  0x96   :  { %v254_v32 = vpop.permute.xlu0 %253  ;;  %v249_v39 = vpop.permute.xlu1 %248 }
  0xbf   :  { %v188_v43 = vpop.f32.mrf.mxu0 }
  0xc0   :  { %v189_v6 = vadd.f32 %v188_v43, %v61_v5 }
  0xc2   :  { %v212_v9 = vmax.f32 %v189_v6, 0.0 }
  0xc4   :  { %v203_v42 = vpop.f32.mrf.mxu3  ;;  %v197_v46 = vpop.f32.mrf.mxu2 }
  0xc5   :  { %v204_v56 = vadd.f32 %v203_v42, %v86_v45  ;;  %v198_v62 = vadd.f32 %v197_v46, %v76_v49  ;;  %v244_v42 = vpop.permute.xlu2 %243  ;;  %v239_v45 = vpop.permute.xlu0 %238 }
  0xc7   :  { %v191_v48 = vpop.f32.mrf.mxu0  ;;  %v217_v61 = vmax.f32 %v204_v56, 0.0  ;;  %v215_v3 = vmax.f32 %v198_v62, 0.0 }
  0xc8   :  { %v192_v4 = vadd.f32 %v191_v48, %v66_v2 }
  0xca   :  { %v213_v8 = vmax.f32 %v192_v4, 0.0 }
  0xcc   :  { %v206_v47 = vpop.f32.mrf.mxu3  ;;  %v200_v55 = vpop.f32.mrf.mxu2 }
  0xcd   :  { %v207_v52 = vadd.f32 %v206_v47, %v91_v50  ;;  %v201_v59 = vadd.f32 %v200_v55, %v81_v54  ;;  %v350_v50 = vld [vmem:[%s719_s5] sm:$0x3] }
  0xcf   :  { %v218_v58 = vmax.f32 %v207_v52, 0.0  ;;  %v194_v60 = vpop.f32.mrf.mxu0  ;;  %v216_v0 = vmax.f32 %v201_v59, 0.0 }
  0xd0   :  { %v195_v1 = vadd.f32 %v194_v60, %v71_v63 }
  0xd2   :  { %v214_v7 = vmax.f32 %v195_v1, 0.0 }
  0xd4   :  { %v209_v51 = vpop.f32.mrf.mxu3 }
  0xd5   :  { %v210_v53 = vadd.f32 %v209_v51, %v96_v44  ;;  %v355_v51 = vpop.permute.xlu1 %354 }
  0xd7   :  { %v219_v57 = vmax.f32 %v210_v53, 0.0 }
  0xd9   :  { %309 = vmatpush.msra.mxu1 %v219_v57 }
  0xdb   :  { %310 = vmatpush.msra.mxu1 %v218_v58 }
  0xdd   :  { %311 = vmatpush.msra.mxu1 %v217_v61 }
  0xdf   :  { %312 = vmatpush.msra.mxu1 %v216_v0 }
  0xe1   :  { %313 = vmatpush.msra.mxu1 %v215_v3 }
  0xe3   :  { %314 = vmatpush.msra.mxu1 %v214_v7 }
  0xe5   :  { %315 = vmatpush.msra.mxu1 %v213_v8 }
  0xe7   :  { %316 = vmatpush.msra.mxu1 %v212_v9 }
  0xe8   :  { %409 = vmatmul.msk.f32.vlgmr.msra.gmra.mxu1 %vm276_vm1, %v220_v10 }
  0xf0   :  { %410 = vmatmul.msk.f32.gmra.mxu1 %vm276_vm1, %v221_v11 }
  0xf8   :  { %411 = vmatmul.msk.f32.gmra.mxu1 %vm276_vm1, %v222_v12 }
 0x100   :  { %412 = vmatmul.msk.f32.gmra.mxu1 %vm276_vm1, %v223_v13 }
 0x108   :  { %413 = vmatmul.msk.f32.gmra.mxu1 %vm276_vm1, %v224_v14 }
 0x110   :  { %414 = vmatmul.msk.f32.gmra.mxu1 %vm276_vm1, %v225_v15 }
 0x118   :  { %415 = vmatmul.msk.f32.gmra.mxu1 %vm276_vm1, %v226_v16 }
 0x120   :  { %416 = vmatmul.msk.f32.gmra.mxu1 %vm276_vm1, %v227_v17 }
 0x165   :  { %v318_v18 = vpop.f32.mrf.mxu1 }
 0x166   :  { %v319_v46 = vadd.f32 %v318_v18, %v239_v45 }
 0x168   :  { %v342_v49 = vmax.f32 %v319_v46, 0.0 }
 0x16d   :  { %v321_v19 = vpop.f32.mrf.mxu1 }
 0x16e   :  { %v322_v43 = vadd.f32 %v321_v19, %v244_v42 }
 0x170   :  { %v343_v48 = vmax.f32 %v322_v43, 0.0 }
 0x175   :  { %v324_v20 = vpop.f32.mrf.mxu1 }
 0x176   :  { %v325_v40 = vadd.f32 %v324_v20, %v249_v39 }
 0x178   :  { %v344_v47 = vmax.f32 %v325_v40, 0.0 }
 0x17d   :  { %v327_v21 = vpop.f32.mrf.mxu1 }
 0x17e   :  { %v328_v37 = vadd.f32 %v327_v21, %v254_v32 }
 0x180   :  { %v345_v44 = vmax.f32 %v328_v37, 0.0 }
 0x185   :  { %v330_v22 = vpop.f32.mrf.mxu1 }
 0x186   :  { %v331_v35 = vadd.f32 %v330_v22, %v259_v28 }
 0x188   :  { %v346_v41 = vmax.f32 %v331_v35, 0.0 }
 0x18d   :  { %v333_v23 = vpop.f32.mrf.mxu1 }
 0x18e   :  { %v334_v33 = vadd.f32 %v333_v23, %v264_v27 }
 0x190   :  { %v347_v38 = vmax.f32 %v334_v33, 0.0 }
 0x195   :  { %v336_v26 = vpop.f32.mrf.mxu1 }
 0x196   :  { %v337_v30 = vadd.f32 %v336_v26, %v269_v25 }
 0x198   :  { %v348_v36 = vmax.f32 %v337_v30, 0.0 }
 0x19d   :  { %v339_v29 = vpop.f32.mrf.mxu1 }
 0x19e   :  { %v340_v31 = vadd.f32 %v339_v29, %v274_v24 }
 0x1a0   :  { %v349_v34 = vmax.f32 %v340_v31, 0.0 }
 0x1a2   :  { %368 = vmatpush.msrb.mxu2 %v349_v34 }
 0x1a4   :  { %369 = vmatpush.msrb.mxu2 %v348_v36 }
 0x1a6   :  { %370 = vmatpush.msrb.mxu2 %v347_v38 }
 0x1a8   :  { %371 = vmatpush.msrb.mxu2 %v346_v41 }
 0x1aa   :  { %372 = vmatpush.msrb.mxu2 %v345_v44 }
 0x1ac   :  { %373 = vmatpush.msrb.mxu2 %v344_v47 }
 0x1ae   :  { %374 = vmatpush.msrb.mxu2 %v343_v48 }
 0x1b0   :  { %375 = vmatpush.msrb.mxu2 %v342_v49 }
 0x1b1   :  { %417 = vmatmul.msk.f32.vlgmr.msrb.gmra.mxu2 %vm276_vm1, %v350_v50 }
 0x234   :  { %v377_v52 = vpop.f32.mrf.mxu2 }
 0x235   :  { %v378_v53 = vadd.f32 %v377_v52, %v355_v51 }
 0x237   :  { %380 = vst [vmem:[%s720_s7] sm:$0x3] %v378_v53 }

</bundles_post_ra>
